<compile_context>
chip_gen: v7x
topology: tpu7x:2x2x1
jax: 0.10.0
libtpu: 0.0.40
codegen_flags: <defaults>
</compile_context>

<pallas_src>
import jax
import jax.numpy as jnp
from jax.experimental import pallas as pl
from jax.experimental.pallas import tpu as pltpu


def model_kernel(x_ref, w_ref, b_ref, y_ref):
    # x_ref: (4, B) f32 VMEM. Row k holds flat element k (= 2*i + j) of every
    #        problem's x1[i, j]; problems live on the lane axis.
    # w_ref: (4,) f32 SMEM = weight.reshape(-1) = [w00, w01, w10, w11]
    # b_ref: (2,) f32 SMEM = [b0, b1]
    x = x_ref[...]                                   # (4, B)
    r = jnp.maximum(x, 0.0)                          # relu(x1) rows, (4, B)

    w00 = w_ref[0]
    w01 = w_ref[1]
    w10 = w_ref[2]
    w11 = w_ref[3]
    b0 = b_ref[0]
    b1 = b_ref[1]

    # x2[b, i, j] = relu(x1[b, j, i])  (the permute).  In flat-row terms:
    #   x2[:, i, 0] over i  == rows [r0, r1]  == p
    #   x2[:, i, 1] over i  == rows [r2, r3]  == q
    p = r[0:2, :]                                    # (2, B)
    q = r[2:4, :]                                    # (2, B)

    # v2[b, i, o] = sigmoid(W[o,0]*x2[b,i,0] + W[o,1]*x2[b,i,1] + bias[o])
    s0 = jax.nn.sigmoid(w00 * p + w01 * q + b0)      # o = 0, rows indexed by i
    s1 = jax.nn.sigmoid(w10 * p + w11 * q + b1)      # o = 1, rows indexed by i

    # torch.max(v2, dim=-1): values + indices over o (2-way; ties -> index 0).
    mx = jnp.maximum(s0, s1)                         # (2, B)
    idx = (s1 > s0).astype(jnp.float32)              # (2, B)
    v3 = mx + idx                                    # (2, B); row i = v3[b, i]

    v30 = v3[0:1, :]                                 # (1, B)
    v31 = v3[1:2, :]                                 # (1, B)

    # x3[b, i, j] = v3[b, j] + x2[b, i, j]  (torch (1,2)+(1,2,2) broadcast)
    # y  [b, i, j] = x3[b, i, j] - x1[b, i, j]   (fixed-up final subtraction)
    # TODO(synk): original `x3 - x1.view(1, 4)` is an invalid broadcast in
    # PyTorch; implemented as elementwise x3 - x1.
    y_ref[0:1, :] = v30 + r[0:1, :] - x[0:1, :]      # (i=0, j=0)
    y_ref[1:2, :] = v31 + r[2:3, :] - x[1:2, :]      # (i=0, j=1)
    y_ref[2:3, :] = v30 + r[1:2, :] - x[2:3, :]      # (i=1, j=0)
    y_ref[3:4, :] = v31 + r[3:4, :] - x[3:4, :]      # (i=1, j=1)


@jax.jit
def model_forward(x1, weight, bias):
    """x1: (B, 2, 2); weight: (2, 2); bias: (2,).  Returns (B, 2, 2) f32."""
    B = x1.shape[0]
    assert x1.shape[1:] == (2, 2)

    # Lane-dense layout: (B, 2, 2) -> (B, 4) -> (4, B); batch on lanes.
    xt = x1.reshape(B, 4).T.astype(jnp.float32)      # (4, B)
    w = weight.reshape(-1).astype(jnp.float32)       # (4,)
    b = bias.reshape(-1).astype(jnp.float32)         # (2,)

    yt = pl.pallas_call(
        model_kernel,
        out_shape=jax.ShapeDtypeStruct((4, B), jnp.float32),
        in_specs=[
            pl.BlockSpec(memory_space=pltpu.MemorySpace.VMEM),   # x slab
            pl.BlockSpec(memory_space=pltpu.MemorySpace.SMEM),   # weight scalars
            pl.BlockSpec(memory_space=pltpu.MemorySpace.SMEM),   # bias scalars
        ],
        out_specs=pl.BlockSpec(memory_space=pltpu.MemorySpace.VMEM),
        input_output_aliases={0: 0},                  # reuse x slab's HBM buffer
    )(xt, w, b)

    return yt.T.reshape(B, 2, 2)


def reference_forward(x1, weight, bias):
    """Pure-JAX reference with the same (fixed-up) semantics, vmapped over B."""
    x1 = x1.astype(jnp.float32)
    v1 = jnp.transpose(x1, (0, 2, 1))
    x2 = jax.nn.relu(v1)
    v2 = jax.nn.sigmoid(jnp.einsum("bij,oj->bio", x2, weight) + bias)
    mx = jnp.max(v2, axis=-1)                           # (B, 2)
    ix = jnp.argmax(v2, axis=-1).astype(jnp.float32)    # (B, 2)
    v3 = mx + ix
    x3 = v3[:, None, :] + x2                            # (B, 2, 2): v3 broadcast over i
    return x3 - x1                                      # fixed-up final subtraction


if __name__ == "__main__":
    key = jax.random.PRNGKey(0)
    k_w, k_b, k_x, k_xb = jax.random.split(key, 4)

    # nn.Linear(2, 2) init: uniform(-1/sqrt(in), 1/sqrt(in))
    bound = 2.0 ** -0.5
    weight = jax.random.uniform(k_w, (2, 2), jnp.float32, -bound, bound)
    bias = jax.random.uniform(k_b, (2,), jnp.float32, -bound, bound)

    # 1) Module-spec shape: x1 = (1, 2, 2)
    x1 = jax.random.normal(k_x, (1, 2, 2), jnp.float32)
    y = jax.block_until_ready(model_forward(x1, weight, bias))
    y_ref = reference_forward(x1, weight, bias)
    assert y.shape == (1, 2, 2)
    assert jnp.allclose(y, y_ref, atol=1e-5, rtol=1e-5), (y, y_ref)

    # 2) Batched lane-dense path: 256 independent 2x2 problems in one call.
    xb = jax.random.normal(k_xb, (256, 2, 2), jnp.float32)
    yb = jax.block_until_ready(model_forward(xb, weight, bias))
    yb_ref = reference_forward(xb, weight, bias)
    assert jnp.allclose(yb, yb_ref, atol=1e-5, rtol=1e-5)

    # 3) Exact-tie argmax check (identical rows of W/bias -> index 0).
    w_tie = jnp.stack([weight[0], weight[0]])
    b_tie = jnp.stack([bias[0], bias[0]])
    yt_ = jax.block_until_ready(model_forward(x1, w_tie, b_tie))
    yt_ref = reference_forward(x1, w_tie, b_tie)
    assert jnp.allclose(yt_, yt_ref, atol=1e-5, rtol=1e-5)

    print("KERNEL_OK")
</pallas_src>

<mosaic_0001>
module attributes {stable_mosaic.version = 11 : i64} {
  func.func @model_kernel(%arg0: memref<4x1xf32, #tpu.memory_space<vmem>>, %arg1: memref<4xf32, #tpu.memory_space<smem>>, %arg2: memref<2xf32, #tpu.memory_space<smem>>, %arg3: memref<4x1xf32, #tpu.memory_space<vmem>>) attributes {dimension_semantics = [], scalar_prefetch = 0 : i64, scratch_operands = 0 : i64, tpu.core_type = #tpu.core_type<tc>} {
    %c0 = arith.constant 0 : index
    %c0_0 = arith.constant 0 : index
    %0 = vector.load %arg0[%c0, %c0_0] : memref<4x1xf32, #tpu.memory_space<vmem>>, vector<4x1xf32>
    %cst = arith.constant 0.000000e+00 : f32
    %1 = vector.broadcast %cst : f32 to vector<4x1xf32>
    %2 = arith.maximumf %0, %1 : vector<4x1xf32>
    %c0_1 = arith.constant 0 : index
    %3 = memref.load %arg1[%c0_1] : memref<4xf32, #tpu.memory_space<smem>>
    %c1 = arith.constant 1 : index
    %4 = memref.load %arg1[%c1] : memref<4xf32, #tpu.memory_space<smem>>
    %c2 = arith.constant 2 : index
    %5 = memref.load %arg1[%c2] : memref<4xf32, #tpu.memory_space<smem>>
    %c3 = arith.constant 3 : index
    %6 = memref.load %arg1[%c3] : memref<4xf32, #tpu.memory_space<smem>>
    %c0_2 = arith.constant 0 : index
    %7 = memref.load %arg2[%c0_2] : memref<2xf32, #tpu.memory_space<smem>>
    %c1_3 = arith.constant 1 : index
    %8 = memref.load %arg2[%c1_3] : memref<2xf32, #tpu.memory_space<smem>>
    %9 = vector.extract_strided_slice %2 {offsets = [0, 0], sizes = [2, 1], strides = [1, 1]} : vector<4x1xf32> to vector<2x1xf32>
    %10 = vector.extract_strided_slice %2 {offsets = [2, 0], sizes = [2, 1], strides = [1, 1]} : vector<4x1xf32> to vector<2x1xf32>
    %11 = vector.broadcast %3 : f32 to vector<2x1xf32>
    %12 = arith.mulf %11, %9 : vector<2x1xf32>
    %13 = vector.broadcast %4 : f32 to vector<2x1xf32>
    %14 = arith.mulf %13, %10 : vector<2x1xf32>
    %15 = arith.addf %12, %14 : vector<2x1xf32>
    %16 = vector.broadcast %7 : f32 to vector<2x1xf32>
    %17 = arith.addf %15, %16 : vector<2x1xf32>
    %18 = arith.negf %17 : vector<2x1xf32>
    %19 = math.exp %18 : vector<2x1xf32>
    %cst_4 = arith.constant 1.000000e+00 : f32
    %20 = vector.broadcast %cst_4 : f32 to vector<2x1xf32>
    %21 = arith.addf %20, %19 : vector<2x1xf32>
    %22 = arith.divf %20, %21 : vector<2x1xf32>
    %23 = vector.broadcast %5 : f32 to vector<2x1xf32>
    %24 = arith.mulf %23, %9 : vector<2x1xf32>
    %25 = vector.broadcast %6 : f32 to vector<2x1xf32>
    %26 = arith.mulf %25, %10 : vector<2x1xf32>
    %27 = arith.addf %24, %26 : vector<2x1xf32>
    %28 = vector.broadcast %8 : f32 to vector<2x1xf32>
    %29 = arith.addf %27, %28 : vector<2x1xf32>
    %30 = arith.negf %29 : vector<2x1xf32>
    %31 = math.exp %30 : vector<2x1xf32>
    %cst_5 = arith.constant 1.000000e+00 : f32
    %32 = vector.broadcast %cst_5 : f32 to vector<2x1xf32>
    %33 = arith.addf %32, %31 : vector<2x1xf32>
    %34 = arith.divf %32, %33 : vector<2x1xf32>
    %35 = arith.maximumf %22, %34 : vector<2x1xf32>
    %36 = arith.cmpf ogt, %34, %22 : vector<2x1xf32>
    %37 = arith.extui %36 : vector<2x1xi1> to vector<2x1xi32>
    %38 = arith.sitofp %37 : vector<2x1xi32> to vector<2x1xf32>
    %39 = arith.addf %35, %38 : vector<2x1xf32>
    %40 = vector.extract_strided_slice %39 {offsets = [0, 0], sizes = [1, 1], strides = [1, 1]} : vector<2x1xf32> to vector<1x1xf32>
    %41 = vector.extract_strided_slice %39 {offsets = [1, 0], sizes = [1, 1], strides = [1, 1]} : vector<2x1xf32> to vector<1x1xf32>
    %42 = vector.extract_strided_slice %2 {offsets = [0, 0], sizes = [1, 1], strides = [1, 1]} : vector<4x1xf32> to vector<1x1xf32>
    %43 = arith.addf %40, %42 : vector<1x1xf32>
    %44 = vector.extract_strided_slice %0 {offsets = [0, 0], sizes = [1, 1], strides = [1, 1]} : vector<4x1xf32> to vector<1x1xf32>
    %45 = arith.subf %43, %44 : vector<1x1xf32>
    %c0_6 = arith.constant 0 : index
    %c0_7 = arith.constant 0 : index
    %46 = vector.load %arg3[%c0_6, %c0_7] : memref<4x1xf32, #tpu.memory_space<vmem>>, vector<1x1xf32>
    tpu.vector_store %arg3[%c0_6, %c0_7], %45 {strides = array<i32>} : memref<4x1xf32, #tpu.memory_space<vmem>>, vector<1x1xf32>,
    %47 = vector.extract_strided_slice %2 {offsets = [2, 0], sizes = [1, 1], strides = [1, 1]} : vector<4x1xf32> to vector<1x1xf32>
    %48 = arith.addf %41, %47 : vector<1x1xf32>
    %49 = vector.extract_strided_slice %0 {offsets = [1, 0], sizes = [1, 1], strides = [1, 1]} : vector<4x1xf32> to vector<1x1xf32>
    %50 = arith.subf %48, %49 : vector<1x1xf32>
    %c1_8 = arith.constant 1 : index
    %c0_9 = arith.constant 0 : index
    %51 = vector.load %arg3[%c1_8, %c0_9] : memref<4x1xf32, #tpu.memory_space<vmem>>, vector<1x1xf32>
    tpu.vector_store %arg3[%c1_8, %c0_9], %50 {strides = array<i32>} : memref<4x1xf32, #tpu.memory_space<vmem>>, vector<1x1xf32>,
    %52 = vector.extract_strided_slice %2 {offsets = [1, 0], sizes = [1, 1], strides = [1, 1]} : vector<4x1xf32> to vector<1x1xf32>
    %53 = arith.addf %40, %52 : vector<1x1xf32>
    %54 = vector.extract_strided_slice %0 {offsets = [2, 0], sizes = [1, 1], strides = [1, 1]} : vector<4x1xf32> to vector<1x1xf32>
    %55 = arith.subf %53, %54 : vector<1x1xf32>
    %c2_10 = arith.constant 2 : index
    %c0_11 = arith.constant 0 : index
    %56 = vector.load %arg3[%c2_10, %c0_11] : memref<4x1xf32, #tpu.memory_space<vmem>>, vector<1x1xf32>
    tpu.vector_store %arg3[%c2_10, %c0_11], %55 {strides = array<i32>} : memref<4x1xf32, #tpu.memory_space<vmem>>, vector<1x1xf32>,
    %57 = vector.extract_strided_slice %2 {offsets = [3, 0], sizes = [1, 1], strides = [1, 1]} : vector<4x1xf32> to vector<1x1xf32>
    %58 = arith.addf %41, %57 : vector<1x1xf32>
    %59 = vector.extract_strided_slice %0 {offsets = [3, 0], sizes = [1, 1], strides = [1, 1]} : vector<4x1xf32> to vector<1x1xf32>
    %60 = arith.subf %58, %59 : vector<1x1xf32>
    %c3_12 = arith.constant 3 : index
    %c0_13 = arith.constant 0 : index
    %61 = vector.load %arg3[%c3_12, %c0_13] : memref<4x1xf32, #tpu.memory_space<vmem>>, vector<1x1xf32>
    tpu.vector_store %arg3[%c3_12, %c0_13], %60 {strides = array<i32>} : memref<4x1xf32, #tpu.memory_space<vmem>>, vector<1x1xf32>,
    return
  }
}

</mosaic_0001>

<bundles_post_ra>
// kernel: model_forward.1
= control target key start
LH: loop header
LB: loop body
LE: loop exit
PB: predicated region body
PF: predicated region fallthrough
CT: control target
= control target key end

     0   :  { %8 = vsyncpa [#allocation3], 0  ;;  %s201_s0 = inlined_call_operand.vmem [shape: f32[4,1], index: 0, kind: input, shape index: {}, may-alias: {0,3}]   ;;  %s202_s1 = inlined_call_operand.vmem [shape: f32[4], index: 1, kind: input, shape index: {}]   ;;  %s203_s2 = inlined_call_operand.vmem [shape: f32[2], index: 2, kind: input, shape index: {}]   ;;  %s204_s3 = inlined_call_operand.vmem [shape: f32[4,1], index: 3, kind: output, shape index: {}, may-alias: {0,3}]  }
   0x1   :  { %s18_s14 = sshll.u32 %s202_s1, 4  ;;  %s19_s14 = int_to_ptr.vmem [resolvable:$true] %s18_s14 }
   0x2   :  { %9 = vsyncpa [#allocation5], 0  ;;  %s28_s17 = sshll.u32 %s203_s2, 4  ;;  %s129_s18 = scalar_lea.vmem %s19_s14, 16  ;;  %s29_s17 = int_to_ptr.vmem [resolvable:$true] %s28_s17 }
   0x3   :  { %p130_p0 = scmp.ne.s32.totalorder %s19_s14, %s129_s18  ;;  %p134_p1 = scmp.lt.s32.totalorder %s19_s14, %s19_s14 }
   0x4   :  { %p135_p2 = scmp.lt.s32.totalorder %s129_s18, %s129_s18 }
   0x6   :  { %p136_p3 = por %p135_p2, %p134_p1 }
   0x8   :  { %p137_p4 = pnand %p136_p3, %p130_p0 }
   0xa   :  { %140 = shalt.err (!%p137_p4)
}
   0xb   :  { %s157_s19 = smov [#allocation2]   ;;  %s141_s20 = scalar_lea.vmem %s29_s17, 16 }
   0xc   :  { %21 = dma.vmem_to_smem %s19_s14, 16, %s157_s19, [#allocation3]  }
   0xd   :  { %p142_p5 = scmp.ne.s32.totalorder %s29_s17, %s141_s20  ;;  %p146_p6 = scmp.lt.s32.totalorder %s29_s17, %s29_s17 }
   0xe   :  { %p147_p7 = scmp.lt.s32.totalorder %s141_s20, %s141_s20 }
  0x10   :  { %p148_p8 = por %p147_p7, %p146_p6 }
  0x12   :  { %p149_p9 = pnand %p148_p8, %p142_p5 }
  0x14   :  { %152 = shalt.err (!%p149_p9)
}
  0x15   :  { %s158_s1 = smov [#allocation4]  }
  0x16   :  { %31 = dma.vmem_to_smem %s29_s17, 16, %s158_s1, [#allocation5]  }
  0x17   :  { %153 = dma.done.wait [#allocation3], 16  }
  0x18   :  { %154 = vsyncadd [#allocation3], 4294967280 }
  0x19   :  { %155 = dma.done.wait [#allocation5], 16  }
  0x1a   :  { %156 = vsyncadd [#allocation5], 4294967280 }
  0x1b   :  { %38 = sfence }
  0x1c   :  { %v39_v0 = vld [vmem:[%s201_s0] sm:$0xf]  ;;  %s41_s22 = sld [smem:[#allocation2]]  ;;  %s111_s23 = sld [smem:[#allocation2 + $0x1]]  ;;  %v159_v29 = vmov 0.0   ;;  %vm86_vm1 = vcmask 0  }
  0x1d   :  { %s112_s24 = sld [smem:[#allocation2 + $0x2]]  ;;  %s113_s25 = sld [smem:[#allocation2 + $0x3]]  ;;  %v40_v1 = vmax.f32 %v39_v0, 0.0  ;;  %v96_v32 = vrot.slane %v39_v0, 2  ;;  %vm93_vm2 = vcmask 1025  }
  0x1e   :  { %s45_s26 = sld [smem:[#allocation4]]  ;;  %s114_s27 = sld [smem:[#allocation4 + $0x1]] }
  0x1f   :  { %v89_v27 = vrot.slane %v40_v1, 1  ;;  %v100_v28 = vrot.slane %v40_v1, 2 }
  0x22   :  { %v47_v2 = vstv %s41_s22  ;;  %v49_v3 = vstv %s111_s23 }
  0x23   :  { %v48_v4 = vmul.f32 %v47_v2, %v40_v1  ;;  %v50_v5 = vmul.f32 %v49_v3, %v40_v1  ;;  %v63_v6 = vstv %s112_s24  ;;  %v65_v7 = vstv %s113_s25 }
  0x24   :  { %v64_v8 = vmul.f32 %v63_v6, %v40_v1  ;;  %v66_v9 = vmul.f32 %v65_v7, %v40_v1  ;;  %v55_v11 = vstv %s45_s26  ;;  %v71_v14 = vstv %s114_s27 }
  0x25   :  { %v52_v10 = vrot.slane %v50_v5, 2 }
  0x26   :  { %v68_v12 = vrot.slane %v66_v9, 2 }
  0x27   :  { %v54_v13 = vadd.f32 %v52_v10, %v48_v4 }
  0x28   :  { %v70_v15 = vadd.f32 %v68_v12, %v64_v8 }
  0x29   :  { %v56_v16 = vadd.f32 %v55_v11, %v54_v13 }
  0x2a   :  { %v72_v17 = vadd.f32 %v71_v14, %v70_v15 }
  0x2b   :  { %v115_v18 = vmul.f32 -1.442695, %v56_v16 }
  0x2c   :  { %v116_v19 = vmul.f32 -1.442695, %v72_v17 }
  0x2d   :  { %121 = vpow2.f32 %v115_v18 }
  0x2e   :  { %123 = vpow2.f32 %v116_v19 }
  0x37   :  { %v122_v20 = vpop.eup %121 }
  0x38   :  { %v124_v21 = vpop.eup %123  ;;  %v60_v22 = vadd.f32 1.0, %v122_v20 }
  0x39   :  { %v76_v23 = vadd.f32 1.0, %v124_v21 }
  0x3a   :  { %125 = vrcp.f32 %v60_v22 }
  0x3b   :  { %127 = vrcp.f32 %v76_v23 }
  0x44   :  { %v126_v24 = vpop.eup %125 }
  0x45   :  { %v128_v25 = vpop.eup %127 }
  0x46   :  { %v79_v26 = vmax.f32 %v126_v24, %v128_v25  ;;  %vm80_vm0 = vcmp.gt.f32.partialorder %v128_v25, %v126_v24 }
  0x47   :  { %v117_v30 = vsel %vm80_vm0, 1.0, %v159_v29 }
  0x48   :  { %v83_v31 = vadd.f32 %v117_v30, %v79_v26 }
  0x4a   :  { %v84_v33 = vadd.f32 %v83_v31, %v40_v1  ;;  %v91_v34 = vadd.f32 %v89_v27, %v83_v31  ;;  %v102_v35 = vadd.f32 %v100_v28, %v83_v31 }
  0x4c   :  { %v85_v36 = vsub.f32 %v84_v33, %v39_v0  ;;  %v92_v37 = vsub.f32 %v91_v34, %v39_v0  ;;  %v98_v38 = vsub.f32 %v91_v34, %v96_v32  ;;  %v103_v39 = vsub.f32 %v102_v35, %v96_v32 }
  0x4e   :  { %87 = vst.msk [vmem:[%s204_s3] sm:$0x1] %vm86_vm1, %v85_v36  ;;  %99 = vst.msk [vmem:[%s204_s3 + $0x2] sm:$0x1] %vm86_vm1, %v98_v38 }
  0x4f   :  { %94 = vst.msk [vmem:[%s204_s3] sm:$0x2] %vm93_vm2, %v92_v37  ;;  %104 = vst.msk [vmem:[%s204_s3 + $0x2] sm:$0x2] %vm93_vm2, %v103_v39 }
  0x50   :  { %109 = vsyncpa [#allocation3], 1 }
  0x51   :  { %110 = vsyncpa [#allocation5], 1 }

</bundles_post_ra>
